<compile_context>
chip_gen: v5e
topology: v5e:2x2
jax: 0.10.0
libtpu: 0.0.40
codegen_flags: <defaults>
</compile_context>

<pallas_src>
import functools

import jax
import jax.numpy as jnp
import numpy as np
from jax.experimental import pallas as pl
from jax.experimental.pallas import tpu as pltpu


def _round_up(x, m):
    return (x + m - 1) // m * m


# ---------------------------------------------------------------------------
# Fused Pallas kernel: in/out/loop propagation + norm + combine + tanh
# ---------------------------------------------------------------------------
def _fused_kernel(comp_type, loop_row, n_tile, single_nblock,
                  head_ref, tail_ref, etype_ref, norm_ref,
                  nodes_ref, rel_ref, w_io_ref, w_loop_ref,
                  o_ref, acc_ref):
    f32, bf16 = jnp.float32, jnp.bfloat16
    n_pad, _ = nodes_ref.shape
    r_pad, _ = rel_ref.shape
    e_tile = head_ref.shape[-1]

    nb = pl.program_id(0)            # node block axis   ("parallel")
    m = pl.program_id(1)             # mode: 0=in, 1=out ("arbitrary", shared acc)
    e = pl.program_id(2)             # edge block axis   ("arbitrary", shared acc)
    last_m = pl.num_programs(1) - 1
    last_e = pl.num_programs(2) - 1

    @pl.when(jnp.logical_and(m == 0, e == 0))
    def _init():
        acc_ref[...] = jnp.zeros_like(acc_ref)

    head = head_ref[0]               # (1, E_tile) int32  (padded edges = -1)
    tail = tail_ref[0]
    etype = etype_ref[0]
    norm = norm_ref[0]               # (1, E_tile) f32    (padded edges = 0)

    # ---- gather nodes[tail] and rel_full[etype] via one-hot bf16 MXU matmuls
    iota_n = jax.lax.broadcasted_iota(jnp.int32, (n_pad, e_tile), 0)
    oh_tail = (iota_n == tail).astype(bf16)                       # (N_pad, E_t)
    iota_r = jax.lax.broadcasted_iota(jnp.int32, (r_pad, e_tile), 0)
    oh_rel = (iota_r == etype).astype(bf16)                       # (R_pad, E_t)

    ent = jax.lax.dot_general(oh_tail, nodes_ref[...],
                              (((0,), (0,)), ((), ())),
                              preferred_element_type=f32)          # (E_t, C_in)
    rel = jax.lax.dot_general(oh_rel, rel_ref[...],
                              (((0,), (0,)), ((), ())),
                              preferred_element_type=f32)          # (E_t, C_in)

    if comp_type == 'sub':
        comp = ent - rel
    elif comp_type == 'mul':
        comp = ent * rel
    else:
        # TODO(synk): comp_type == 'corr' (circular correlation / FFT) unsupported.
        raise NotImplementedError("comp_type 'corr' not supported")

    msg = jnp.dot(comp.astype(bf16), w_io_ref[0],
                  preferred_element_type=f32)                      # (E_t, C_out)

    # ---- scatter-add to this node block; fold the GCN norm into the one-hot
    #      (VPU broadcast-mul) so no (E, 1) MXU matmuls are needed.
    if single_nblock:
        oh_head = (iota_n == head).astype(f32)                     # N_tile == N_pad
    else:
        row0 = pl.multiple_of(nb * n_tile, n_tile)
        iota_t = jax.lax.broadcasted_iota(jnp.int32, (n_tile, e_tile), 0)
        oh_head = (iota_t == (head - row0)).astype(f32)
    oh_head = (oh_head * norm).astype(bf16)                        # (N_t, E_t)
    acc_ref[...] += jnp.dot(oh_head, msg.astype(bf16),
                            preferred_element_type=f32)            # (N_t, C_out)

    # ---- finalize: add self-loop messages, (in+out+loop)/3, tanh, store ----
    @pl.when(jnp.logical_and(m == last_m, e == last_e))
    def _finalize():
        if single_nblock:
            nodes_blk = nodes_ref[...]
        else:
            row0 = pl.multiple_of(nb * n_tile, n_tile)
            nodes_blk = nodes_ref[pl.ds(row0, n_tile), :]
        loop_rel = rel_ref[loop_row:loop_row + 1, :]               # (1, C_in)
        if comp_type == 'sub':
            comp_l = nodes_blk.astype(f32) - loop_rel.astype(f32)
        else:
            comp_l = nodes_blk.astype(f32) * loop_rel.astype(f32)
        loop_msg = jnp.dot(comp_l.astype(bf16), w_loop_ref[...],
                           preferred_element_type=f32)             # (N_t, C_out)
        o_ref[...] = jnp.tanh(
            (acc_ref[...] + loop_msg) * jnp.float32(1.0 / 3.0)).astype(o_ref.dtype)


# ---------------------------------------------------------------------------
# Forward wrapper (padding / tiling / pallas_call glue)
# ---------------------------------------------------------------------------
@functools.partial(jax.jit, static_argnames=('comp_type',))
def compgcn_non_first_layer_forward(nodes_features, edge_index, edge_type,
                                    relation_embedding, params, comp_type='sub'):
    if comp_type not in ('sub', 'mul'):
        raise NotImplementedError("comp_type 'corr' not supported")  # TODO(synk)

    f32, bf16 = jnp.float32, jnp.bfloat16
    N, c_in = nodes_features.shape
    c_out = params['w_in'].shape[1]
    rel_full = jnp.concatenate(
        [relation_embedding, params['loop_rel']], axis=0).astype(f32)   # (R+1, C_in)
    r1 = rel_full.shape[0]

    E = edge_index.shape[1] // 2
    in_idx, out_idx = edge_index[:, :E], edge_index[:, E:]
    in_t, out_t = edge_type[:E], edge_type[E:]

    # Per-edge symmetric GCN norm.  Degrees must be computed over ALL edges of a
    # mode (cannot be done per E-tile), so this tiny (E,)-sized pass stays in XLA.
    def edge_norm(idx):
        head, tail = idx[0], idx[1]
        deg = jnp.zeros((N,), f32).at[head].add(1.0)
        dinv = jnp.where(deg > 0, jax.lax.rsqrt(deg), 0.0)
        return dinv[head] * dinv[tail]

    norm_in, norm_out = edge_norm(in_idx), edge_norm(out_idx)

    # ---- padding / tiling ---------------------------------------------------
    e_tile = min(512, _round_up(max(E, 1), 128))        # edge tile (lane axis)
    e_pad = _round_up(max(E, 1), e_tile)
    n_tile = min(128, _round_up(N, 8))                  # output node tile
    n_pad = _round_up(N, n_tile)
    n_blocks = n_pad // n_tile
    r_pad = _round_up(r1, 8)

    def pad_e(vec, fill):
        return jnp.pad(vec.astype(jnp.int32), (0, e_pad - E), constant_values=fill)

    heads = jnp.stack([pad_e(in_idx[0], -1), pad_e(out_idx[0], -1)])[:, None, :]
    tails = jnp.stack([pad_e(in_idx[1], -1), pad_e(out_idx[1], -1)])[:, None, :]
    etypes = jnp.stack([pad_e(in_t, -1), pad_e(out_t, -1)])[:, None, :]
    norms = jnp.stack([jnp.pad(norm_in, (0, e_pad - E)),
                       jnp.pad(norm_out, (0, e_pad - E))])[:, None, :].astype(f32)

    nodes_p = jnp.pad(nodes_features.astype(f32),
                      ((0, n_pad - N), (0, 0))).astype(bf16)          # (N_pad, C_in)
    rel_p = jnp.pad(rel_full, ((0, r_pad - r1), (0, 0))).astype(bf16)  # (R_pad, C_in)
    w_io = jnp.stack([params['w_in'], params['w_out']]).astype(bf16)   # (2, C_in, C_out)
    w_loop = params['w_loop'].astype(bf16)

    kernel = functools.partial(_fused_kernel, comp_type, r1 - 1, n_tile,
                               n_blocks == 1)

    out_padded = pl.pallas_call(
        kernel,
        out_shape=jax.ShapeDtypeStruct((n_pad, c_out), f32),
        grid=(n_blocks, 2, e_pad // e_tile),
        in_specs=[
            pl.BlockSpec((1, 1, e_tile), lambda nb, m, e: (m, 0, e)),    # head
            pl.BlockSpec((1, 1, e_tile), lambda nb, m, e: (m, 0, e)),    # tail
            pl.BlockSpec((1, 1, e_tile), lambda nb, m, e: (m, 0, e)),    # edge type
            pl.BlockSpec((1, 1, e_tile), lambda nb, m, e: (m, 0, e)),    # per-edge norm
            pl.BlockSpec((n_pad, c_in), lambda nb, m, e: (0, 0)),        # nodes (gather src)
            pl.BlockSpec((r_pad, c_in), lambda nb, m, e: (0, 0)),        # rel_full (+loop row)
            pl.BlockSpec((1, c_in, c_out), lambda nb, m, e: (m, 0, 0)),  # w_in / w_out
            pl.BlockSpec((c_in, c_out), lambda nb, m, e: (0, 0)),        # w_loop
        ],
        out_specs=pl.BlockSpec((n_tile, c_out), lambda nb, m, e: (nb, 0)),
        scratch_shapes=[pltpu.VMEM((n_tile, c_out), f32)],
        compiler_params=pltpu.CompilerParams(
            dimension_semantics=("parallel", "arbitrary", "arbitrary"),
            vmem_limit_bytes=32 * 1024 * 1024),
    )(heads, tails, etypes, norms, nodes_p, rel_p, w_io, w_loop)

    out = out_padded[:N]
    # (R+1, C_in) @ (C_in, C_out) is too small to justify a pallas_call — XLA handles it.
    out_2 = jnp.dot(rel_full, params['weight_rel'].astype(f32))
    return out, out_2[:-1]


# ---------------------------------------------------------------------------
# Pure-JAX reference (for correctness check)
# ---------------------------------------------------------------------------
def _ref_forward(nodes, edge_index, edge_type, rel_emb, params, comp_type='sub'):
    rel_full = jnp.concatenate([rel_emb, params['loop_rel']], axis=0)
    N = nodes.shape[0]
    ne = edge_index.shape[1] // 2

    def norm_fn(head, tail):
        deg = jnp.zeros((N,), jnp.float32).at[head].add(1.0)
        dinv = jnp.where(deg > 0, deg ** -0.5, 0.0)
        return dinv[head] * dinv[tail]

    def prop(head, tail, etype, W, norm):
        ent = nodes[tail]
        rel = rel_full[etype]
        comp = ent - rel if comp_type == 'sub' else ent * rel
        msg = comp @ W
        if norm is not None:
            msg = msg * norm[:, None]
        return jnp.zeros((N, W.shape[1]), jnp.float32).at[head].add(msg)

    in_idx, out_idx = edge_index[:, :ne], edge_index[:, ne:]
    in_t, out_t = edge_type[:ne], edge_type[ne:]
    loop = jnp.arange(N)
    loop_t = jnp.full((N,), rel_full.shape[0] - 1)

    in_res = prop(in_idx[0], in_idx[1], in_t, params['w_in'],
                  norm_fn(in_idx[0], in_idx[1]))
    loop_res = prop(loop, loop, loop_t, params['w_loop'], None)
    out_res = prop(out_idx[0], out_idx[1], out_t, params['w_out'],
                   norm_fn(out_idx[0], out_idx[1]))

    out = jnp.tanh((in_res + out_res + loop_res) / 3.0)
    out_2 = rel_full @ params['weight_rel']
    return out, out_2[:-1]


# ---------------------------------------------------------------------------
# Main
# ---------------------------------------------------------------------------
def _xavier(key, shape):
    fan_in, fan_out = shape
    std = float(np.sqrt(2.0 / (fan_in + fan_out)))
    return jax.random.normal(key, shape, dtype=jnp.float32) * std


if __name__ == "__main__":
    in_channels, out_channels = 32, 32
    num_relations = 4
    num_nodes = 16
    num_edges = 12                      # per direction; total edges = 24

    key = jax.random.PRNGKey(0)
    keys = jax.random.split(key, 10)

    params = {
        'weight_rel': _xavier(keys[0], (in_channels, out_channels)),
        'loop_rel':   _xavier(keys[1], (1, in_channels)),
        'w_in':       _xavier(keys[2], (in_channels, out_channels)),
        'w_out':      _xavier(keys[3], (in_channels, out_channels)),
        'w_loop':     _xavier(keys[4], (in_channels, out_channels)),
    }

    nodes_features = jax.random.normal(keys[5], (num_nodes, in_channels), jnp.float32)
    relation_embedding = jax.random.normal(keys[6], (num_relations, in_channels), jnp.float32)
    edge_index = jax.random.randint(keys[7], (2, 2 * num_edges), 0, num_nodes, jnp.int32)
    edge_type = jax.random.randint(keys[8], (2 * num_edges,), 0, num_relations, jnp.int32)

    out, out_2 = compgcn_non_first_layer_forward(
        nodes_features, edge_index, edge_type, relation_embedding, params,
        comp_type='sub')
    jax.block_until_ready((out, out_2))

    # Reference in f32.  For `out`, feed the same bf16-rounded features/weights the
    # kernel uses on the MXU so the comparison isolates kernel correctness from the
    # (intentional) bf16 input precision; out_2 is pure f32 in both paths.
    rd = lambda a: a.astype(jnp.bfloat16).astype(jnp.float32)
    params_rd = {k: (v if k == 'weight_rel' else rd(v)) for k, v in params.items()}
    ref_out, _ = _ref_forward(rd(nodes_features), edge_index, edge_type,
                              rd(relation_embedding), params_rd, comp_type='sub')
    _, ref_out_2 = _ref_forward(nodes_features, edge_index, edge_type,
                                relation_embedding, params, comp_type='sub')
    jax.block_until_ready((ref_out, ref_out_2))

    np.testing.assert_allclose(np.asarray(out), np.asarray(ref_out),
                               rtol=2e-2, atol=2e-2)
    np.testing.assert_allclose(np.asarray(out_2), np.asarray(ref_out_2),
                               rtol=1e-5, atol=1e-5)
    assert out.shape == (num_nodes, out_channels)
    assert out_2.shape == (num_relations, out_channels)

    print("KERNEL_OK")
</pallas_src>

<mosaic_0001>
module attributes {stable_mosaic.version = 11 : i64} {
  func.func @_fused_kernel(%arg0: i32, %arg1: i32, %arg2: i32, %arg3: memref<1x1x128xi32, #tpu.memory_space<vmem>>, %arg4: memref<1x1x128xi32, #tpu.memory_space<vmem>>, %arg5: memref<1x1x128xi32, #tpu.memory_space<vmem>>, %arg6: memref<1x1x128xf32, #tpu.memory_space<vmem>>, %arg7: memref<16x32xbf16, #tpu.memory_space<vmem>>, %arg8: memref<8x32xbf16, #tpu.memory_space<vmem>>, %arg9: memref<1x32x32xbf16, #tpu.memory_space<vmem>>, %arg10: memref<32x32xbf16, #tpu.memory_space<vmem>>, %arg11: memref<16x32xf32, #tpu.memory_space<vmem>>, %arg12: memref<16x32xf32, #tpu.memory_space<vmem>>) attributes {dimension_semantics = [#tpu.dimension_semantics<parallel>, #tpu.dimension_semantics<arbitrary>, #tpu.dimension_semantics<arbitrary>], iteration_bounds = array<i64: 1, 2, 1>, scalar_prefetch = 0 : i64, scratch_operands = 1 : i64, tpu.core_type = #tpu.core_type<tc>, window_params = [{transform_indices = @transform_0, window_bounds = array<i64: 1, 1, 128>}, {transform_indices = @transform_1, window_bounds = array<i64: 1, 1, 128>}, {transform_indices = @transform_2, window_bounds = array<i64: 1, 1, 128>}, {transform_indices = @transform_3, window_bounds = array<i64: 1, 1, 128>}, {pipeline_mode = #tpu.pipeline_mode<synchronous>, transform_indices = @transform_4, window_bounds = array<i64: 16, 32>}, {pipeline_mode = #tpu.pipeline_mode<synchronous>, transform_indices = @transform_5, window_bounds = array<i64: 8, 32>}, {transform_indices = @transform_6, window_bounds = array<i64: 1, 32, 32>}, {pipeline_mode = #tpu.pipeline_mode<synchronous>, transform_indices = @transform_7, window_bounds = array<i64: 32, 32>}, {transform_indices = @transform_8, window_bounds = array<i64: 16, 32>}]} {
    %c0_i32 = arith.constant 0 : i32
    %0 = arith.cmpi eq, %arg1, %c0_i32 : i32
    %c0_i32_0 = arith.constant 0 : i32
    %1 = arith.cmpi eq, %arg2, %c0_i32_0 : i32
    %2 = arith.andi %0, %1 : i1
    %3 = arith.extui %2 : i1 to i32
    %c0_i32_1 = arith.constant 0 : i32
    %4 = arith.cmpi ne, %3, %c0_i32_1 : i32
    scf.if %4 {
      %cst_29 = arith.constant 0.000000e+00 : f32
      %51 = vector.broadcast %cst_29 : f32 to vector<16x32xf32>
      %c0_30 = arith.constant 0 : index
      %c0_31 = arith.constant 0 : index
      %52 = vector.load %arg12[%c0_30, %c0_31] : memref<16x32xf32, #tpu.memory_space<vmem>>, vector<16x32xf32>
      tpu.vector_store %arg12[%c0_30, %c0_31], %51 {strides = array<i32>} : memref<16x32xf32, #tpu.memory_space<vmem>>, vector<16x32xf32>,
    } else {
    }
    %c0 = arith.constant 0 : index
    %c0_2 = arith.constant 0 : index
    %c0_3 = arith.constant 0 : index
    %5 = vector.load %arg3[%c0, %c0_2, %c0_3] : memref<1x1x128xi32, #tpu.memory_space<vmem>>, vector<1x1x128xi32>
    %6 = vector.shape_cast %5 : vector<1x1x128xi32> to vector<1x128xi32>
    %c0_4 = arith.constant 0 : index
    %c0_5 = arith.constant 0 : index
    %c0_6 = arith.constant 0 : index
    %7 = vector.load %arg4[%c0_4, %c0_5, %c0_6] : memref<1x1x128xi32, #tpu.memory_space<vmem>>, vector<1x1x128xi32>
    %8 = vector.shape_cast %7 : vector<1x1x128xi32> to vector<1x128xi32>
    %c0_7 = arith.constant 0 : index
    %c0_8 = arith.constant 0 : index
    %c0_9 = arith.constant 0 : index
    %9 = vector.load %arg5[%c0_7, %c0_8, %c0_9] : memref<1x1x128xi32, #tpu.memory_space<vmem>>, vector<1x1x128xi32>
    %10 = vector.shape_cast %9 : vector<1x1x128xi32> to vector<1x128xi32>
    %c0_10 = arith.constant 0 : index
    %c0_11 = arith.constant 0 : index
    %c0_12 = arith.constant 0 : index
    %11 = vector.load %arg6[%c0_10, %c0_11, %c0_12] : memref<1x1x128xf32, #tpu.memory_space<vmem>>, vector<1x1x128xf32>
    %12 = vector.shape_cast %11 : vector<1x1x128xf32> to vector<1x128xf32>
    %13 = tpu.iota {dimensions = array<i32: 0>} : vector<16x128xi32>
    %14 = vector.broadcast %8 : vector<1x128xi32> to vector<16x128xi32>
    %15 = arith.cmpi eq, %13, %14 : vector<16x128xi32>
    %16 = arith.extui %15 : vector<16x128xi1> to vector<16x128xi32>
    %17 = arith.sitofp %16 : vector<16x128xi32> to vector<16x128xf32>
    %18 = arith.truncf %17 : vector<16x128xf32> to vector<16x128xbf16>
    %19 = tpu.iota {dimensions = array<i32: 0>} : vector<8x128xi32>
    %20 = vector.broadcast %10 : vector<1x128xi32> to vector<8x128xi32>
    %21 = arith.cmpi eq, %19, %20 : vector<8x128xi32>
    %22 = arith.extui %21 : vector<8x128xi1> to vector<8x128xi32>
    %23 = arith.sitofp %22 : vector<8x128xi32> to vector<8x128xf32>
    %24 = arith.truncf %23 : vector<8x128xf32> to vector<8x128xbf16>
    %c0_13 = arith.constant 0 : index
    %c0_14 = arith.constant 0 : index
    %25 = vector.load %arg7[%c0_13, %c0_14] : memref<16x32xbf16, #tpu.memory_space<vmem>>, vector<16x32xbf16>
    %cst = arith.constant dense<0.000000e+00> : vector<128x32xf32>
    %26 = tpu.matmul %18, %25, %cst {dimension_numbers = #tpu.dot_dimension_numbers<[0], [0], [1], [1], [0, 1, 1, 1], [], []>} : vector<16x128xbf16>, vector<16x32xbf16>, vector<128x32xf32> -> vector<128x32xf32>
    %c0_15 = arith.constant 0 : index
    %c0_16 = arith.constant 0 : index
    %27 = vector.load %arg8[%c0_15, %c0_16] : memref<8x32xbf16, #tpu.memory_space<vmem>>, vector<8x32xbf16>
    %cst_17 = arith.constant dense<0.000000e+00> : vector<128x32xf32>
    %28 = tpu.matmul %24, %27, %cst_17 {dimension_numbers = #tpu.dot_dimension_numbers<[0], [0], [1], [1], [0, 1, 1, 1], [], []>} : vector<8x128xbf16>, vector<8x32xbf16>, vector<128x32xf32> -> vector<128x32xf32>
    %29 = arith.subf %26, %28 : vector<128x32xf32>
    %30 = arith.truncf %29 : vector<128x32xf32> to vector<128x32xbf16>
    %c0_18 = arith.constant 0 : index
    %c0_19 = arith.constant 0 : index
    %c0_20 = arith.constant 0 : index
    %31 = vector.load %arg9[%c0_18, %c0_19, %c0_20] : memref<1x32x32xbf16, #tpu.memory_space<vmem>>, vector<1x32x32xbf16>
    %32 = vector.shape_cast %31 : vector<1x32x32xbf16> to vector<32x32xbf16>
    %cst_21 = arith.constant dense<0.000000e+00> : vector<128x32xf32>
    %33 = tpu.matmul %30, %32, %cst_21 {dimension_numbers = #tpu.dot_dimension_numbers<[1], [0], [0], [1], [0, 0, 1, 1], [], []>} : vector<128x32xbf16>, vector<32x32xbf16>, vector<128x32xf32> -> vector<128x32xf32>
    %34 = vector.broadcast %6 : vector<1x128xi32> to vector<16x128xi32>
    %35 = arith.cmpi eq, %13, %34 : vector<16x128xi32>
    %36 = arith.extui %35 : vector<16x128xi1> to vector<16x128xi32>
    %37 = arith.sitofp %36 : vector<16x128xi32> to vector<16x128xf32>
    %38 = vector.broadcast %12 : vector<1x128xf32> to vector<16x128xf32>
    %39 = arith.mulf %37, %38 : vector<16x128xf32>
    %40 = arith.truncf %39 : vector<16x128xf32> to vector<16x128xbf16>
    %c0_22 = arith.constant 0 : index
    %c0_23 = arith.constant 0 : index
    %41 = vector.load %arg12[%c0_22, %c0_23] : memref<16x32xf32, #tpu.memory_space<vmem>>, vector<16x32xf32>
    %42 = arith.truncf %33 : vector<128x32xf32> to vector<128x32xbf16>
    %cst_24 = arith.constant dense<0.000000e+00> : vector<16x32xf32>
    %43 = tpu.matmul %40, %42, %cst_24 {dimension_numbers = #tpu.dot_dimension_numbers<[1], [0], [0], [1], [0, 0, 1, 1], [], []>} : vector<16x128xbf16>, vector<128x32xbf16>, vector<16x32xf32> -> vector<16x32xf32>
    %44 = arith.addf %41, %43 : vector<16x32xf32>
    %c0_25 = arith.constant 0 : index
    %c0_26 = arith.constant 0 : index
    %45 = vector.load %arg12[%c0_25, %c0_26] : memref<16x32xf32, #tpu.memory_space<vmem>>, vector<16x32xf32>
    tpu.vector_store %arg12[%c0_25, %c0_26], %44 {strides = array<i32>} : memref<16x32xf32, #tpu.memory_space<vmem>>, vector<16x32xf32>,
    %c1_i32 = arith.constant 1 : i32
    %46 = arith.cmpi eq, %arg1, %c1_i32 : i32
    %c0_i32_27 = arith.constant 0 : i32
    %47 = arith.cmpi eq, %arg2, %c0_i32_27 : i32
    %48 = arith.andi %46, %47 : i1
    %49 = arith.extui %48 : i1 to i32
    %c0_i32_28 = arith.constant 0 : i32
    %50 = arith.cmpi ne, %49, %c0_i32_28 : i32
    scf.if %50 {
      %c0_29 = arith.constant 0 : index
      %c0_30 = arith.constant 0 : index
      %51 = vector.load %arg7[%c0_29, %c0_30] : memref<16x32xbf16, #tpu.memory_space<vmem>>, vector<16x32xbf16>
      %c4 = arith.constant 4 : index
      %c0_31 = arith.constant 0 : index
      %52 = vector.load %arg8[%c4, %c0_31] : memref<8x32xbf16, #tpu.memory_space<vmem>>, vector<1x32xbf16>
      %53 = arith.extf %51 : vector<16x32xbf16> to vector<16x32xf32>
      %54 = arith.extf %52 : vector<1x32xbf16> to vector<1x32xf32>
      %55 = vector.broadcast %54 : vector<1x32xf32> to vector<16x32xf32>
      %56 = arith.subf %53, %55 : vector<16x32xf32>
      %57 = arith.truncf %56 : vector<16x32xf32> to vector<16x32xbf16>
      %c0_32 = arith.constant 0 : index
      %c0_33 = arith.constant 0 : index
      %58 = vector.load %arg10[%c0_32, %c0_33] : memref<32x32xbf16, #tpu.memory_space<vmem>>, vector<32x32xbf16>
      %cst_34 = arith.constant dense<0.000000e+00> : vector<16x32xf32>
      %59 = tpu.matmul %57, %58, %cst_34 {dimension_numbers = #tpu.dot_dimension_numbers<[1], [0], [0], [1], [0, 0, 1, 1], [], []>} : vector<16x32xbf16>, vector<32x32xbf16>, vector<16x32xf32> -> vector<16x32xf32>
      %c0_35 = arith.constant 0 : index
      %c0_36 = arith.constant 0 : index
      %60 = vector.load %arg12[%c0_35, %c0_36] : memref<16x32xf32, #tpu.memory_space<vmem>>, vector<16x32xf32>
      %61 = arith.addf %60, %59 : vector<16x32xf32>
      %cst_37 = arith.constant 0.333333343 : f32
      %62 = vector.broadcast %cst_37 : f32 to vector<16x32xf32>
      %63 = arith.mulf %61, %62 : vector<16x32xf32>
      %64 = math.tanh %63 : vector<16x32xf32>
      %c0_38 = arith.constant 0 : index
      %c0_39 = arith.constant 0 : index
      %65 = vector.load %arg11[%c0_38, %c0_39] : memref<16x32xf32, #tpu.memory_space<vmem>>, vector<16x32xf32>
      tpu.vector_store %arg11[%c0_38, %c0_39], %64 {strides = array<i32>} : memref<16x32xf32, #tpu.memory_space<vmem>>, vector<16x32xf32>,
    } else {
    }
    return
  }
  func.func @transform_0(%arg0: i32, %arg1: i32, %arg2: i32) -> (i32, i32, i32) {
    %c0_i32 = arith.constant 0 : i32
    %c0_i32_0 = arith.constant 0 : i32
    return %arg1, %c0_i32, %arg2 : i32, i32, i32
  }
  func.func @transform_1(%arg0: i32, %arg1: i32, %arg2: i32) -> (i32, i32, i32) {
    %c0_i32 = arith.constant 0 : i32
    %c0_i32_0 = arith.constant 0 : i32
    return %arg1, %c0_i32, %arg2 : i32, i32, i32
  }
  func.func @transform_2(%arg0: i32, %arg1: i32, %arg2: i32) -> (i32, i32, i32) {
    %c0_i32 = arith.constant 0 : i32
    %c0_i32_0 = arith.constant 0 : i32
    return %arg1, %c0_i32, %arg2 : i32, i32, i32
  }
  func.func @transform_3(%arg0: i32, %arg1: i32, %arg2: i32) -> (i32, i32, i32) {
    %c0_i32 = arith.constant 0 : i32
    %c0_i32_0 = arith.constant 0 : i32
    return %arg1, %c0_i32, %arg2 : i32, i32, i32
  }
  func.func @transform_4(%arg0: i32, %arg1: i32, %arg2: i32) -> (i32, i32) {
    %c0_i32 = arith.constant 0 : i32
    %c0_i32_0 = arith.constant 0 : i32
    %c0_i32_1 = arith.constant 0 : i32
    return %c0_i32, %c0_i32_0 : i32, i32
  }
  func.func @transform_5(%arg0: i32, %arg1: i32, %arg2: i32) -> (i32, i32) {
    %c0_i32 = arith.constant 0 : i32
    %c0_i32_0 = arith.constant 0 : i32
    %c0_i32_1 = arith.constant 0 : i32
    return %c0_i32, %c0_i32_0 : i32, i32
  }
  func.func @transform_6(%arg0: i32, %arg1: i32, %arg2: i32) -> (i32, i32, i32) {
    %c0_i32 = arith.constant 0 : i32
    %c0_i32_0 = arith.constant 0 : i32
    %c0_i32_1 = arith.constant 0 : i32
    return %arg1, %c0_i32, %c0_i32_0 : i32, i32, i32
  }
  func.func @transform_7(%arg0: i32, %arg1: i32, %arg2: i32) -> (i32, i32) {
    %c0_i32 = arith.constant 0 : i32
    %c0_i32_0 = arith.constant 0 : i32
    %c0_i32_1 = arith.constant 0 : i32
    return %c0_i32, %c0_i32_0 : i32, i32
  }
  func.func @transform_8(%arg0: i32, %arg1: i32, %arg2: i32) -> (i32, i32) {
    %c0_i32 = arith.constant 0 : i32
    %c0_i32_0 = arith.constant 0 : i32
    return %arg0, %c0_i32 : i32, i32
  }
}

</mosaic_0001>

<bundles_post_ra>
// kernel: mul.3
= control target key start
LH: loop header
LB: loop body
LE: loop exit
PB: predicated region body
PF: predicated region fallthrough
CT: control target
= control target key end

     0   :  { %s34_s0 = inlined_call_operand.vmem [shape: f32[12], index: 0, kind: input, shape index: {}]   ;;  %s35_s1 = inlined_call_operand.vmem [shape: f32[12], index: 1, kind: input, shape index: {}]   ;;  %s36_s2 = inlined_call_operand.vmem [shape: f32[12], index: 2, kind: output, shape index: {}]  }
   0x1   :  { %v3_v0 = vld [vmem:[%s34_s0] sm:$0x1] }
   0x2   :  { %v4_v1 = vld [vmem:[%s35_s1] sm:$0x1] }
   0x3   :  { %v7_v2 = vmul.f32 %v4_v1, %v3_v0 }
   0x5   :  { %9 = vst [vmem:[%s36_s2] sm:$0x1] %v7_v2 }

// kernel: compgcn_non_first_layer_forward.1
= control target key start
LH: loop header
LB: loop body
LE: loop exit
PB: predicated region body
PF: predicated region fallthrough
CT: control target
= control target key end

     0   :  { %13 = vsyncpa [#allocation4], 0  ;;  %s1209_s27 = smov 0   ;;  %s1211_s28 = smov 0   ;;  %s1346_s0 = inlined_call_operand.vmem [shape: s32[2,1,128], index: 0, kind: input, shape index: {}]   ;;  %s1347_s1 = inlined_call_operand.vmem [shape: s32[2,1,128], index: 1, kind: input, shape index: {}]   ;;  %s1348_s2 = inlined_call_operand.vmem [shape: s32[2,1,128], index: 2, kind: input, shape index: {}]   ;;  %s1349_s3 = inlined_call_operand.vmem [shape: f32[2,1,128], index: 3, kind: input, shape index: {}]   ;;  %s1350_s4 = inlined_call_operand.vmem [shape: bf16[16,32], index: 4, kind: input, shape index: {}]   ;;  %s1351_s5 = inlined_call_operand.vmem [shape: bf16[8,32], index: 5, kind: input, shape index: {}]   ;;  %s1352_s6 = inlined_call_operand.vmem [shape: bf16[2,32,32], index: 6, kind: input, shape index: {}]   ;;  %s1353_s7 = inlined_call_operand.vmem [shape: bf16[32,32], index: 7, kind: input, shape index: {}]   ;;  %s1354_s8 = inlined_call_operand.hbm [shape: f32[16,32], index: 8, kind: output, shape index: {}]  }
   0x1   :  { %s1213_s29 = smov 0  }
   0x2 LB: > { %s968_s30 = sadd.s32 4294967295, %s1157_s29   ;;  %s34_s9 = sadd.s32 1, %s1153_s28  ;;  %s1157_s29 = sphi %s1213_s29, %s19_s29   ;;  %s1153_s28 = sphi %s1211_s28, %s1356_s28   ;;  %s1149_s27 = sphi %s1209_s27, %s1355_s27  }
   0x3   : > { %p36_p0 = scmp.ge.s32.totalorder %s34_s9, 2  ;;  %p971_p1 = scmp.ge.s32.totalorder %s1157_s29, 1 }
   0x4   : > { %p334_p2 = scmp.lt.s32.totalorder %s1157_s29, 3 }
   0x5   : > { %s1358_s9 = smov (%p36_p0, %s34_s9), 0 }
   0x6   : > { %p335_p3 = pnand %p971_p1, %p334_p2 }
   0x7   : > { %p387_p4 = scmp.lt.s32.totalorder (!%p335_p3), %s1149_s27, 1  ;;  %p418_p5 = scmp.eq.s32.totalorder (!%p335_p3), %s1149_s27, 0 }
   0x8   : > { %338 = sbr.rel (%p335_p3) target bundleno = 801 (0x321), region = 52 }
   0xd   : > { %s1233_s10 = scalar_select %p387_p4, %s1149_s27, 1  ;;  %vm424_vm0 = vcmask (%p418_p5), 261120   ;;  %v1159_v0 = vmov (%p418_p5), 0.0  }
   0xe   : > { %423 = sbr.rel (!%p418_p5) target bundleno = 19 (0x13), region = 56  ;;  %425 = vst.msk [vmem:[#allocation2] sm:$0xff] (%p418_p5), %vm424_vm0, %v1159_v0 }
   0xf   : > { %s392_s13 = scalar_lea.vmem %s1346_s0, %s1233_s10  ;;  %s398_s16 = scalar_lea.vmem %s1347_s1, %s1233_s10  ;;  %426 = vst.msk [vmem:[#allocation2 + $0x8] sm:$0xff] (%p418_p5), %vm424_vm0, %v1159_v0 }
  0x10   : > { %s404_s19 = scalar_lea.vmem %s1348_s2, %s1233_s10  ;;  %s410_s22 = scalar_lea.vmem %s1349_s3, %s1233_s10 }
  0x11   : > { %s1030_s23 = sshll.u32 %s1233_s10, 4 }
  0x12   : > { %s1255_s26 = scalar_lea.vmem %s1352_s6, %s1030_s23 }
  0x13 PF: > { %v431_v1 = vlaneseq  ;;  %v1095_v2 = vld [vmem:[%s398_s16] ss:$0 sm:$0xff]  ;;  %v1160_v7 = vmov 0.0   ;;  %vm587_vm4 = vcmask 1043456   ;;  %vm471_vm5 = vcmask 130048   ;;  %v1034_v28 = vld [vmem:[%s1255_s26 + $0x8] sm:$0xff] }
  0x14   : > { %v1096_v3 = vld [vmem:[%s404_s19] ss:$0 sm:$0xff]  ;;  %vm562_vm6 = vcmask 64512   ;;  %711 = vmatpush.bf16.msra.mxu2 %v1034_v28  ;;  %vm680_vm7 = vcmask 261120   ;;  %p795_p6 = scmp.eq.s32.totalorder %s1149_s27, 1 }
  0x15   : > { %v1032_v4 = vld [vmem:[%s1350_s4] sm:$0xff]  ;;  %v1260_v5 = vshrl.u32 %v431_v1, 7 }
  0x16   : > { %503 = vmatpush.bf16.msra.mxu0 %v1032_v4  ;;  %v545_v13 = vld [vmem:[%s1351_s5] sm:$0xf] }
  0x17   : > { %v1263_v6 = vadd.s32 8, %v1260_v5  ;;  %vm435_vm1 = vcmp.eq.s32.totalorder %v1260_v5, %v1095_v2  ;;  %vm443_vm2 = vcmp.eq.s32.totalorder %v1260_v5, %v1096_v3  ;;  %v589_v14 = vsel %vm587_vm4, %v545_v13, 0  ;;  %v1033_v30 = vld [vmem:[%s1255_s26] sm:$0xff] }
  0x18   : > { %v975_v8 = vsel %vm435_vm1, 1.0, %v1160_v7  ;;  %v977_v9 = vsel %vm443_vm2, 1.0, %v1160_v7  ;;  %598 = vmatpush.bf16.msra.mxu1 %v589_v14  ;;  %712 = vmatpush.bf16.msra.mxu2 %v1033_v30 }
  0x19   : > { %vm436_vm3 = vcmp.eq.s32.totalorder %v1263_v6, %v1095_v2  ;;  %v446_v10 = vpack.c.bf16 %v977_v9, %v977_v9 }
  0x1a   : > { %v976_v11 = vsel %vm436_vm3, 1.0, %v1160_v7 }
  0x1b   : > { %v441_v12 = vpack.c.bf16 %v976_v11, %v975_v8 }
  0x1d   : > { %1078 = vxpose.binary.xlu0.c.b16.start.end [1/2] (short) %v446_v10, %v441_v12, 128 }
  0xc9   : > { %v1079_v15 = vpop.trf.xlu0 }
  0xca   : > { %982 = vmatmul.msk.bf16.vlgmr.msra.gmra.mxu0 %vm471_vm5, %v1079_v15 }
  0xd1   : > { %v1080_v16 = vpop.trf.xlu0 }
  0xd2   : > { %990 = vmatmul.msk.bf16.vlgmr.msra.gmra.mxu1 %vm562_vm6, %v1080_v16 }
  0xd9   : > { %v1081_v17 = vpop.trf.xlu0 }
  0xda   : > { %983 = vmatmul.msk.bf16.gmra.mxu0 %vm471_vm5, %v1081_v17 }
  0xe1   : > { %v1082_v18 = vpop.trf.xlu0 }
  0xe2   : > { %991 = vmatmul.msk.bf16.gmra.mxu1 %vm562_vm6, %v1082_v18 }
  0xe9   : > { %v1083_v19 = vpop.trf.xlu0 }
  0xea   : > { %984 = vmatmul.msk.bf16.gmra.mxu0 %vm471_vm5, %v1083_v19 }
  0xf1   : > { %v1084_v20 = vpop.trf.xlu0 }
  0xf2   : > { %992 = vmatmul.msk.bf16.gmra.mxu1 %vm562_vm6, %v1084_v20 }
  0xf9   : > { %v1085_v21 = vpop.trf.xlu0 }
  0xfa   : > { %985 = vmatmul.msk.bf16.gmra.mxu0 %vm471_vm5, %v1085_v21 }
 0x101   : > { %v1086_v22 = vpop.trf.xlu0 }
 0x102   : > { %993 = vmatmul.msk.bf16.gmra.mxu1 %vm562_vm6, %v1086_v22 }
 0x109   : > { %v1087_v23 = vpop.trf.xlu0 }
 0x10a   : > { %986 = vmatmul.msk.bf16.gmra.mxu0 %vm471_vm5, %v1087_v23 }
 0x111   : > { %v1088_v24 = vpop.trf.xlu0 }
 0x112   : > { %994 = vmatmul.msk.bf16.gmra.mxu1 %vm562_vm6, %v1088_v24 }
 0x119   : > { %v1089_v25 = vpop.trf.xlu0 }
 0x11a   : > { %987 = vmatmul.msk.bf16.gmra.mxu0 %vm471_vm5, %v1089_v25 }
 0x121   : > { %v1090_v26 = vpop.trf.xlu0 }
 0x122   : > { %995 = vmatmul.msk.bf16.gmra.mxu1 %vm562_vm6, %v1090_v26 }
 0x129   : > { %v1091_v27 = vpop.trf.xlu0 }
 0x12a   : > { %988 = vmatmul.msk.bf16.gmra.mxu0 %vm471_vm5, %v1091_v27 }
 0x131   : > { %v1092_v29 = vpop.trf.xlu0 }
 0x132   : > { %996 = vmatmul.msk.bf16.gmra.mxu1 %vm562_vm6, %v1092_v29 }
 0x139   : > { %v1093_v31 = vpop.trf.xlu0 }
 0x13a   : > { %989 = vmatmul.msk.bf16.gmra.mxu0 %vm471_vm5, %v1093_v31 }
 0x141   : > { %v1094_v32 = vpop.trf.xlu0 }
 0x142   : > { %997 = vmatmul.msk.bf16.gmra.mxu1 %vm562_vm6, %v1094_v32 }
 0x147   : > { %v505_v33 = vpop.f32.mrf.mxu0 }
 0x14f   : > { %v507_v34 = vpop.f32.mrf.mxu0  ;;  %v600_v35 = vpop.f32.mrf.mxu1 }
 0x150   : > { %v640_v38 = vsub.f32 %v505_v33, %v600_v35 }
 0x157   : > { %v510_v36 = vpop.f32.mrf.mxu0  ;;  %v602_v37 = vpop.f32.mrf.mxu1 }
 0x158   : > { %v641_v39 = vsub.f32 %v507_v34, %v602_v37 }
 0x15a   : > { %v656_v40 = vpack.c.bf16 %v641_v39, %v640_v38 }
 0x15c   : > { %1006 = vmatmul.msk.bf16.vlgmr.msra.gmra.mxu2 %vm680_vm7, %v656_v40 }
 0x15f   : > { %v512_v41 = vpop.f32.mrf.mxu0  ;;  %v605_v42 = vpop.f32.mrf.mxu1 }
 0x160   : > { %v642_v45 = vsub.f32 %v510_v36, %v605_v42 }
 0x167   : > { %v515_v43 = vpop.f32.mrf.mxu0  ;;  %v607_v44 = vpop.f32.mrf.mxu1 }
 0x168   : > { %v643_v46 = vsub.f32 %v512_v41, %v607_v44 }
 0x16a   : > { %v657_v47 = vpack.c.bf16 %v643_v46, %v642_v45 }
 0x16c   : > { %1007 = vmatmul.msk.bf16.gmra.mxu2 %vm680_vm7, %v657_v47 }
 0x16f   : > { %v517_v48 = vpop.f32.mrf.mxu0  ;;  %v610_v49 = vpop.f32.mrf.mxu1 }
 0x170   : > { %v644_v52 = vsub.f32 %v515_v43, %v610_v49 }
 0x177   : > { %v520_v50 = vpop.f32.mrf.mxu0  ;;  %v612_v51 = vpop.f32.mrf.mxu1 }
 0x178   : > { %v645_v53 = vsub.f32 %v517_v48, %v612_v51 }
 0x17a   : > { %v658_v54 = vpack.c.bf16 %v645_v53, %v644_v52  ;;  %v1097_v52 = vld [vmem:[%s392_s13] ss:$0 sm:$0xff] }
 0x17b   : > { %vm755_vm8 = vcmp.eq.s32.totalorder %v1260_v5, %v1097_v52  ;;  %vm756_vm9 = vcmp.eq.s32.totalorder %v1263_v6, %v1097_v52  ;;  %v1098_v53 = vld [vmem:[%s410_s22] ss:$0 sm:$0xff] }
 0x17c   : > { %1008 = vmatmul.msk.bf16.gmra.mxu2 %vm680_vm7, %v658_v54  ;;  %v1014_v54 = vsel %vm755_vm8, 1.0, %v1160_v7  ;;  %v767_v5 = vld [vmem:[#allocation2] sm:$0xff] }
 0x17f   : > { %v522_v55 = vpop.f32.mrf.mxu0  ;;  %v615_v56 = vpop.f32.mrf.mxu1 }
 0x180   : > { %v646_v59 = vsub.f32 %v520_v50, %v615_v56  ;;  %v764_v56 = vmul.f32 %v1098_v53, %v1014_v54 }
 0x187   : > { %v525_v57 = vpop.f32.mrf.mxu0  ;;  %v617_v58 = vpop.f32.mrf.mxu1 }
 0x188   : > { %v647_v60 = vsub.f32 %v522_v55, %v617_v58  ;;  %v1015_v55 = vsel %vm756_vm9, 1.0, %v1160_v7  ;;  %v1037_v7 = vld [vmem:[%s1353_s7 + $0x8] sm:$0xff] (%p795_p6) }
 0x189   : > { %835 = vmatpush.bf16.msra.mxu0 (%p795_p6), %v1037_v7 }
 0x18a   : > { %v659_v61 = vpack.c.bf16 %v647_v60, %v646_v59  ;;  %v768_v60 = vld [vmem:[#allocation2 + $0x8] sm:$0xff] }
 0x18c   : > { %1009 = vmatmul.msk.bf16.gmra.mxu2 %vm680_vm7, %v659_v61 }
 0x18f   : > { %v527_v62 = vpop.f32.mrf.mxu0  ;;  %v620_v63 = vpop.f32.mrf.mxu1 }
 0x190   : > { %v648_v2 = vsub.f32 %v525_v57, %v620_v63  ;;  %v765_v57 = vmul.f32 %v1098_v53, %v1015_v55  ;;  %v1039_v63 = vld [vmem:[%s1350_s4] sm:$0xff] (%p795_p6)  }
 0x192   : > { %v766_v58 = vpack.c.bf16 %v765_v57, %v764_v56 }
 0x197   : > { %v530_v0 = vpop.f32.mrf.mxu0  ;;  %v622_v1 = vpop.f32.mrf.mxu1 }
 0x198   : > { %v649_v3 = vsub.f32 %v527_v62, %v622_v1  ;;  %v1036_v1 = vld [vmem:[%s1353_s7] sm:$0xff] (%p795_p6) }
 0x199   : > { %836 = vmatpush.bf16.msra.mxu0 (%p795_p6), %v1036_v1 }
 0x19a   : > { %v660_v4 = vpack.c.bf16 %v649_v3, %v648_v2  ;;  %v1040_v2 = vunpack.c.l.bf16 (%p795_p6), %v1039_v63  ;;  %v1041_v3 = vunpack.c.h.bf16 (%p795_p6), %v1039_v63 }
 0x19c   : > { %1010 = vmatmul.msk.bf16.gmra.mxu2 %vm680_vm7, %v660_v4 }
 0x19f   : > { %v532_v8 = vpop.f32.mrf.mxu0  ;;  %v625_v9 = vpop.f32.mrf.mxu1 }
 0x1a0   : > { %v650_v11 = vsub.f32 %v530_v0, %v625_v9  ;;  %v802_v0 = vld [vmem:[%s1351_s5] sm:$0x4] (%p795_p6) }
 0x1a1   : > { %v805_v4 = vunpack.c.l.bf16 (%p795_p6), %v802_v0 }
 0x1a7   : > { %v627_v10 = vpop.f32.mrf.mxu1  ;;  %v535_v13 = vpop.f32.mrf.mxu0 }
 0x1a8   : > { %v651_v12 = vsub.f32 %v532_v8, %v627_v10  ;;  %v806_v8 = vperm.slane (%p795_p6), %v805_v4, 4 }
 0x1aa   : > { %v661_v14 = vpack.c.bf16 %v651_v12, %v650_v11  ;;  %v807_v9 = vsub.f32 (%p795_p6), %v1040_v2, %v806_v8  ;;  %v808_v10 = vsub.f32 (%p795_p6), %v1041_v3, %v806_v8 }
 0x1ac   : > { %1011 = vmatmul.msk.bf16.gmra.mxu2 %vm680_vm7, %v661_v14  ;;  %v809_v11 = vpack.c.bf16 (%p795_p6), %v808_v10, %v807_v9 }
 0x1ae   : > { %1025 = vmatmul.msk.bf16.vlgmr.msra.gmra.mxu0 (%p795_p6), %vm680_vm7, %v809_v11 }
 0x1af   : > { %v630_v15 = vpop.f32.mrf.mxu1  ;;  %v537_v16 = vpop.f32.mrf.mxu0 }
 0x1b0   : > { %v652_v18 = vsub.f32 %v535_v13, %v630_v15 }
 0x1b7   : > { %v632_v17 = vpop.f32.mrf.mxu1  ;;  %v540_v21 = vpop.f32.mrf.mxu0 }
 0x1b8   : > { %v653_v19 = vsub.f32 %v537_v16, %v632_v17 }
 0x1ba   : > { %v662_v20 = vpack.c.bf16 %v653_v19, %v652_v18 }
 0x1bc   : > { %1012 = vmatmul.msk.bf16.gmra.mxu2 %vm680_vm7, %v662_v20 }
 0x1bf   : > { %v635_v22 = vpop.f32.mrf.mxu1  ;;  %v542_v23 = vpop.f32.mrf.mxu0 }
 0x1c0   : > { %v654_v25 = vsub.f32 %v540_v21, %v635_v22 }
 0x1c7   : > { %v637_v24 = vpop.f32.mrf.mxu1 }
 0x1c8   : > { %v655_v26 = vsub.f32 %v542_v23, %v637_v24 }
 0x1ca   : > { %v663_v27 = vpack.c.bf16 %v655_v26, %v654_v25 }
 0x1cc   : > { %1013 = vmatmul.msk.bf16.gmra.mxu2 %vm680_vm7, %v663_v27 }
 0x1df   : > { %v714_v28 = vpop.f32.mrf.mxu2 }
 0x1e7   : > { %v716_v29 = vpop.f32.mrf.mxu2 }
 0x1e8   : > { %v769_v30 = vpack.c.bf16 %v716_v29, %v714_v28 }
 0x1ef   : > { %v719_v31 = vpop.f32.mrf.mxu2 }
 0x1f7   : > { %v721_v32 = vpop.f32.mrf.mxu2 }
 0x1f8   : > { %v770_v33 = vpack.c.bf16 %v721_v32, %v719_v31 }
 0x1ff   : > { %v724_v34 = vpop.f32.mrf.mxu2 }
 0x207   : > { %v726_v35 = vpop.f32.mrf.mxu2 }
 0x208   : > { %v771_v36 = vpack.c.bf16 %v726_v35, %v724_v34 }
 0x20f   : > { %v729_v37 = vpop.f32.mrf.mxu2 }
 0x217   : > { %v731_v38 = vpop.f32.mrf.mxu2 }
 0x218   : > { %v772_v39 = vpack.c.bf16 %v731_v38, %v729_v37 }
 0x21f   : > { %v734_v40 = vpop.f32.mrf.mxu2 }
 0x227   : > { %v736_v41 = vpop.f32.mrf.mxu2 }
 0x228   : > { %v773_v51 = vpack.c.bf16 %v736_v41, %v734_v40 }
 0x22b   : > { %v838_v13 = vpop.f32.mrf.mxu0 (%p795_p6) }
 0x22f   : > { %v739_v42 = vpop.f32.mrf.mxu2 }
 0x233   : > { %v840_v17 = vpop.f32.mrf.mxu0 (%p795_p6) }
 0x237   : > { %v741_v43 = vpop.f32.mrf.mxu2 }
 0x238   : > { %v774_v50 = vpack.c.bf16 %v741_v43, %v739_v42 }
 0x23f   : > { %v744_v44 = vpop.f32.mrf.mxu2 }
 0x247   : > { %v746_v45 = vpop.f32.mrf.mxu2 }
 0x248   : > { %v775_v49 = vpack.c.bf16 %v746_v45, %v744_v44 }
 0x24f   : > { %v749_v46 = vpop.f32.mrf.mxu2 }
 0x257   : > { %v751_v47 = vpop.f32.mrf.mxu2 }
 0x258   : > { %v776_v48 = vpack.c.bf16 %v751_v47, %v749_v46 }
 0x25a   : > { %777 = vmatpush.bf16.msra.mxu3 %v776_v48 }
 0x25e   : > { %778 = vmatpush.bf16.msra.mxu3 %v775_v49 }
 0x262   : > { %779 = vmatpush.bf16.msra.mxu3 %v774_v50 }
 0x266   : > { %780 = vmatpush.bf16.msra.mxu3 %v773_v51 }
 0x26a   : > { %781 = vmatpush.bf16.msra.mxu3 %v772_v39 }
 0x26e   : > { %782 = vmatpush.bf16.msra.mxu3 %v771_v36 }
 0x272   : > { %783 = vmatpush.bf16.msra.mxu3 %v770_v33 }
 0x276   : > { %784 = vmatpush.bf16.msra.mxu3 %v769_v30 }
 0x279   : > { %785 = vmatmul.bf16.vlgmr.msra.gmra.mxu3 %v766_v58 }
 0x2fc   : > { %v786_v59 = vpop.f32.mrf.mxu3 }
 0x2fd   : > { %v791_v6 = vadd.f32 %v786_v59, %v767_v5 }
 0x2ff   : > { %793 = vst.msk [vmem:[#allocation2] sm:$0xff] %vm680_vm7, %v791_v6 }
 0x303   : > { %799 = sbr.rel (!%p795_p6) target bundleno = 795 (0x31b), region = 60 }
 0x304   : > { %v788_v61 = vpop.f32.mrf.mxu3 }
 0x305   : > { %v792_v62 = vadd.f32 %v788_v61, %v768_v60 }
 0x306   : > { %v843_v12 = vld [vmem:[#allocation2] sm:$0xff] (%p795_p6) }
 0x307   : > { %794 = vst.msk [vmem:[#allocation2 + $0x8] sm:$0xff] %vm680_vm7, %v792_v62  ;;  %v845_v14 = vadd.f32 (%p795_p6), %v843_v12, %v838_v13 }
 0x309   : > { %v847_v15 = vmul.f32 0.33333334, %v845_v14 }
 0x30b   : > { %1099 = vtanh.f32 %v847_v15 }
 0x30e   : > { %v844_v16 = vld [vmem:[#allocation2 + $0x8] sm:$0xff] }
 0x30f   : > { %v846_v18 = vadd.f32 %v844_v16, %v840_v17 }
 0x311   : > { %v1100_v19 = vpop.eup %1099  ;;  %v848_v20 = vmul.f32 0.33333334, %v846_v18 }
 0x312   : > { %851 = vst.msk [vmem:[#allocation3] sm:$0xff] %vm680_vm7, %v1100_v19 }
 0x313   : > { %1101 = vtanh.f32 %v848_v20 }
 0x319   : > { %v1102_v21 = vpop.eup %1101 }
 0x31a   : > { %852 = vst.msk [vmem:[#allocation3 + $0x8] sm:$0xff] %vm680_vm7, %v1102_v21 }
 0x31b PF: > { %p1046_p7 = scmp.eq.s32.totalorder %s968_s30, 1  ;;  %s863_s11 = sshll.u32 %s1354_s8, 4  ;;  %s864_s11 = int_to_ptr.hbm [resolvable:$true] %s863_s11 }
 0x31c   : > { %s1161_s12 = smov [#allocation3]   ;;  %s1162_s15 = smov 128  }
 0x31d   : > { %s861_s14 = sshll.u32 %s1161_s12, 4  ;;  %s1163_s16 = smov 8   ;;  %s862_s14 = int_to_ptr.vmem [resolvable:$true] %s861_s14 }
 0x31e   : > { %1043 = dma.vmem_to_hbm [thread:$0]  (%p1046_p7), %s862_s14, 256, %s864_s11, [#allocation4], %s1162_s15, %s1162_s15, %s1163_s16  }
 0x31f   : > { %1144 = dma.done.wait (%p1046_p7), [#allocation4], 256  }
 0x320   : > { %1146 = vsyncadd (%p1046_p7), [#allocation4], 4294967040 }
 0x321 PF: > { %s19_s29 = sadd.s32 1, %s1157_s29   ;;  %s1355_s27 = smov %s1153_s28 }
 0x322   : > { %p16_p8 = scmp.ge.s32.totalorder %s19_s29, 4   ;;  %s1356_s28 = smov %s1358_s9 }
 0x324   :  { %18 = sbr.rel (!%p16_p8) target bundleno = 2 (0x2), region = 100 }
 0x329   :  { %880 = vsyncpa [#allocation4], 1 }
 0x32a   :  { %882 = vsyncpa [#allocation4 + $0x1], 1 }

</bundles_post_ra>
